<compile_context>
chip_gen: v6e
topology: v6e:2x2x1
jax: 0.10.0
libtpu: 0.0.40
codegen_flags: <defaults>
</compile_context>

<pallas_src>
import jax
import jax.numpy as jnp
from jax import lax
from jax.experimental import pallas as pl
from jax.experimental.pallas import tpu as pltpu

LANE = 128                  # vreg lane width
SUB = 8                     # vreg sublane count (f32)
ROW_ALIGN = SUB * LANE      # 1024: keeps R = tile_rows // 128 a multiple of 8
TN_MAX = 16384              # max rows per grid step (~0.5 MiB of f32 logits)
IGNORE_INDEX = -100         # torch.nn.CrossEntropyLoss default


def _cdiv(a, b):
    return -(-a // b)


def _round_up(a, m):
    return _cdiv(a, m) * m


def _choose_tiling(n_rows):
    """Pick (rows_per_step, steps, padded_rows)."""
    n_al = _round_up(max(n_rows, 1), ROW_ALIGN)
    steps = _cdiv(n_al, TN_MAX)                 # cap tile size at TN_MAX rows
    # Keep >= 2 steps when there is enough work: DMA/compute overlap everywhere
    # and megacore sharding on v7x; don't shrink tiles below ~8K rows to do it.
    if steps == 1 and n_al >= 16 * ROW_ALIGN:
        steps = 2
    tn = _round_up(_cdiv(n_al, steps), ROW_ALIGN)
    steps = _cdiv(n_al, tn)
    return tn, steps, steps * tn


def _ce_kernel(n_ref, pred_ref, targ_ref, out_ref):
    """Per-step masked cross-entropy partial sums.

    n_ref   : (1,) int32 in SMEM (scalar prefetch) -- number of real rows N
    pred_ref: (C, R, 128) logits, class on the MAJOR dim
    targ_ref: (R, 128) int32 labels
    out_ref : (2, 128) f32 -- row 0: sum of per-row losses, row 1: valid-row count
    """
    C, R, L = pred_ref.shape
    t = targ_ref[...]                                     # (R, L) int32

    # Per-class slabs: major-dim indexing -> contiguous (R,128) tiles, no
    # sublane extraction.  All ops below are dense over full vregs.
    xs = [pred_ref[c].astype(jnp.float32) for c in range(C)]

    # Numerically-stable logsumexp over classes (elementwise across slabs).
    m = xs[0]
    for c in range(1, C):
        m = jnp.maximum(m, xs[c])                         # VPU max

    s = jnp.exp(xs[0] - m)                                # EUP exp
    tgt = jnp.where(t == 0, xs[0], 0.0)                   # one-hot target select
    for c in range(1, C):
        s = s + jnp.exp(xs[c] - m)
        tgt = jnp.where(t == c, xs[c], tgt)

    loss = m + jnp.log(s) - tgt                           # (R, L) per-row CE

    # Mask zero-padded tail rows and ignore_index rows.
    base = pl.program_id(0) * (R * L)
    row_idx = (base
               + lax.broadcasted_iota(jnp.int32, (R, L), 0) * L
               + lax.broadcasted_iota(jnp.int32, (R, L), 1))
    valid = (row_idx < n_ref[0]) & (t != IGNORE_INDEX)
    loss = jnp.where(valid, loss, 0.0)

    # Lane-dense partial sums (sublane reduce on the XLU, which is otherwise idle).
    out_ref[0:1, :] = jnp.sum(loss, axis=0, keepdims=True)
    out_ref[1:2, :] = jnp.sum(valid.astype(jnp.float32), axis=0, keepdims=True)


def semantic_criterion(pred, targ):
    """pred: (N, C) float logits. targ: (B, M) integer labels with B*M == N."""
    N, C = pred.shape
    targ_flat = targ.reshape(-1).astype(jnp.int32)
    assert targ_flat.shape[0] == N, "B*M must equal N"

    tn, steps, n_pad = _choose_tiling(N)
    R = tn // LANE
    NP_R = n_pad // LANE

    # One-time class-major relayout + small pad (<= ~tile alignment of zero rows).
    # XLA fuses transpose + pad + reshape into a single copy.
    # (If upstream can supply bf16 logits, pass them through unchanged: the kernel
    #  casts to f32 internally, halving logits HBM traffic.)
    pred_t = jnp.pad(pred.T, ((0, 0), (0, n_pad - N))).reshape(C, NP_R, LANE)
    targ_p = jnp.pad(targ_flat, (0, n_pad - N)).reshape(NP_R, LANE)
    n_arr = jnp.array([N], dtype=jnp.int32)

    psums = pl.pallas_call(
        _ce_kernel,
        out_shape=jax.ShapeDtypeStruct((2, steps * LANE), jnp.float32),
        grid_spec=pltpu.PrefetchScalarGridSpec(
            num_scalar_prefetch=1,
            grid=(steps,),
            in_specs=[
                pl.BlockSpec((C, R, LANE), lambda i, n: (0, i, 0)),  # logits slabs
                pl.BlockSpec((R, LANE), lambda i, n: (i, 0)),        # labels
            ],
            out_specs=pl.BlockSpec((2, LANE), lambda i, n: (0, i)),  # partial sums
        ),
        compiler_params=pltpu.CompilerParams(
            dimension_semantics=("parallel",)),   # megacore-shardable on v7x
    )(n_arr, pred_t, targ_p)

    # Tiny final reduction over 2 * steps * 128 floats.
    # TODO(synk): f32 tree sum; use pairwise/f64 accumulation if bit-level parity
    # with the reference matters for very large N.
    sums = jnp.sum(psums, axis=1)
    return sums[0] / sums[1]      # mean over non-ignored rows (nan if all ignored)


def _reference_ce(pred, targ):
    """Plain-JAX reference matching torch.nn.CrossEntropyLoss (mean reduction)."""
    t = targ.reshape(-1)
    logp = jax.nn.log_softmax(pred.astype(jnp.float32), axis=-1)
    per_row = -jnp.take_along_axis(logp, jnp.maximum(t, 0)[:, None], axis=-1)[:, 0]
    valid = (t != IGNORE_INDEX).astype(jnp.float32)
    return jnp.sum(per_row * valid) / jnp.sum(valid)


if __name__ == "__main__":
    key = jax.random.PRNGKey(0)
    k1, k2 = jax.random.split(key)

    B, M, C = 2, 8, 7          # targ: (B, M) labels -> N = 16 rows of logits
    N = B * M
    pred = jax.random.normal(k1, (N, C), dtype=jnp.float32)
    targ = jax.random.randint(k2, (B, M), 0, C, dtype=jnp.int32)

    loss = semantic_criterion(pred, targ)
    loss = jax.block_until_ready(loss)

    ref = _reference_ce(pred, targ)
    assert jnp.allclose(loss, ref, rtol=1e-5, atol=1e-5), (loss, ref)

    print("KERNEL_OK")
</pallas_src>

<mosaic_0001>
module attributes {stable_mosaic.version = 11 : i64} {
  func.func @_ce_kernel(%arg0: i32, %arg1: memref<1xi32, #tpu.memory_space<smem>>, %arg2: memref<7x8x128xf32, #tpu.memory_space<vmem>>, %arg3: memref<8x128xi32, #tpu.memory_space<vmem>>, %arg4: memref<2x128xf32, #tpu.memory_space<vmem>>) attributes {dimension_semantics = [#tpu.dimension_semantics<parallel>], iteration_bounds = array<i64: 1>, scalar_prefetch = 1 : i64, scratch_operands = 0 : i64, tpu.core_type = #tpu.core_type<tc>, window_params = [{transform_indices = @transform_0, window_bounds = array<i64: 7, 8, 128>}, {transform_indices = @transform_1, window_bounds = array<i64: 8, 128>}, {transform_indices = @transform_2, window_bounds = array<i64: 2, 128>}]} {
    %c0 = arith.constant 0 : index
    %c0_0 = arith.constant 0 : index
    %0 = vector.load %arg3[%c0, %c0_0] : memref<8x128xi32, #tpu.memory_space<vmem>>, vector<8x128xi32>
    %c0_1 = arith.constant 0 : index
    %c0_2 = arith.constant 0 : index
    %c0_3 = arith.constant 0 : index
    %1 = vector.load %arg2[%c0_1, %c0_2, %c0_3] : memref<7x8x128xf32, #tpu.memory_space<vmem>>, vector<1x8x128xf32>
    %2 = vector.shape_cast %1 : vector<1x8x128xf32> to vector<8x128xf32>
    %c1 = arith.constant 1 : index
    %c0_4 = arith.constant 0 : index
    %c0_5 = arith.constant 0 : index
    %3 = vector.load %arg2[%c1, %c0_4, %c0_5] : memref<7x8x128xf32, #tpu.memory_space<vmem>>, vector<1x8x128xf32>
    %4 = vector.shape_cast %3 : vector<1x8x128xf32> to vector<8x128xf32>
    %c2 = arith.constant 2 : index
    %c0_6 = arith.constant 0 : index
    %c0_7 = arith.constant 0 : index
    %5 = vector.load %arg2[%c2, %c0_6, %c0_7] : memref<7x8x128xf32, #tpu.memory_space<vmem>>, vector<1x8x128xf32>
    %6 = vector.shape_cast %5 : vector<1x8x128xf32> to vector<8x128xf32>
    %c3 = arith.constant 3 : index
    %c0_8 = arith.constant 0 : index
    %c0_9 = arith.constant 0 : index
    %7 = vector.load %arg2[%c3, %c0_8, %c0_9] : memref<7x8x128xf32, #tpu.memory_space<vmem>>, vector<1x8x128xf32>
    %8 = vector.shape_cast %7 : vector<1x8x128xf32> to vector<8x128xf32>
    %c4 = arith.constant 4 : index
    %c0_10 = arith.constant 0 : index
    %c0_11 = arith.constant 0 : index
    %9 = vector.load %arg2[%c4, %c0_10, %c0_11] : memref<7x8x128xf32, #tpu.memory_space<vmem>>, vector<1x8x128xf32>
    %10 = vector.shape_cast %9 : vector<1x8x128xf32> to vector<8x128xf32>
    %c5 = arith.constant 5 : index
    %c0_12 = arith.constant 0 : index
    %c0_13 = arith.constant 0 : index
    %11 = vector.load %arg2[%c5, %c0_12, %c0_13] : memref<7x8x128xf32, #tpu.memory_space<vmem>>, vector<1x8x128xf32>
    %12 = vector.shape_cast %11 : vector<1x8x128xf32> to vector<8x128xf32>
    %c6 = arith.constant 6 : index
    %c0_14 = arith.constant 0 : index
    %c0_15 = arith.constant 0 : index
    %13 = vector.load %arg2[%c6, %c0_14, %c0_15] : memref<7x8x128xf32, #tpu.memory_space<vmem>>, vector<1x8x128xf32>
    %14 = vector.shape_cast %13 : vector<1x8x128xf32> to vector<8x128xf32>
    %15 = arith.maximumf %2, %4 : vector<8x128xf32>
    %16 = arith.maximumf %15, %6 : vector<8x128xf32>
    %17 = arith.maximumf %16, %8 : vector<8x128xf32>
    %18 = arith.maximumf %17, %10 : vector<8x128xf32>
    %19 = arith.maximumf %18, %12 : vector<8x128xf32>
    %20 = arith.maximumf %19, %14 : vector<8x128xf32>
    %21 = arith.subf %2, %20 : vector<8x128xf32>
    %22 = math.exp %21 : vector<8x128xf32>
    %c0_i32 = arith.constant 0 : i32
    %23 = vector.broadcast %c0_i32 : i32 to vector<8x128xi32>
    %24 = arith.cmpi eq, %0, %23 : vector<8x128xi32>
    %cst = arith.constant 0.000000e+00 : f32
    %25 = vector.broadcast %cst : f32 to vector<8x128xf32>
    %26 = arith.select %24, %2, %25 : vector<8x128xi1>, vector<8x128xf32>
    %27 = arith.subf %4, %20 : vector<8x128xf32>
    %28 = math.exp %27 : vector<8x128xf32>
    %29 = arith.addf %22, %28 : vector<8x128xf32>
    %c1_i32 = arith.constant 1 : i32
    %30 = vector.broadcast %c1_i32 : i32 to vector<8x128xi32>
    %31 = arith.cmpi eq, %0, %30 : vector<8x128xi32>
    %32 = arith.select %31, %4, %26 : vector<8x128xi1>, vector<8x128xf32>
    %33 = arith.subf %6, %20 : vector<8x128xf32>
    %34 = math.exp %33 : vector<8x128xf32>
    %35 = arith.addf %29, %34 : vector<8x128xf32>
    %c2_i32 = arith.constant 2 : i32
    %36 = vector.broadcast %c2_i32 : i32 to vector<8x128xi32>
    %37 = arith.cmpi eq, %0, %36 : vector<8x128xi32>
    %38 = arith.select %37, %6, %32 : vector<8x128xi1>, vector<8x128xf32>
    %39 = arith.subf %8, %20 : vector<8x128xf32>
    %40 = math.exp %39 : vector<8x128xf32>
    %41 = arith.addf %35, %40 : vector<8x128xf32>
    %c3_i32 = arith.constant 3 : i32
    %42 = vector.broadcast %c3_i32 : i32 to vector<8x128xi32>
    %43 = arith.cmpi eq, %0, %42 : vector<8x128xi32>
    %44 = arith.select %43, %8, %38 : vector<8x128xi1>, vector<8x128xf32>
    %45 = arith.subf %10, %20 : vector<8x128xf32>
    %46 = math.exp %45 : vector<8x128xf32>
    %47 = arith.addf %41, %46 : vector<8x128xf32>
    %c4_i32 = arith.constant 4 : i32
    %48 = vector.broadcast %c4_i32 : i32 to vector<8x128xi32>
    %49 = arith.cmpi eq, %0, %48 : vector<8x128xi32>
    %50 = arith.select %49, %10, %44 : vector<8x128xi1>, vector<8x128xf32>
    %51 = arith.subf %12, %20 : vector<8x128xf32>
    %52 = math.exp %51 : vector<8x128xf32>
    %53 = arith.addf %47, %52 : vector<8x128xf32>
    %c5_i32 = arith.constant 5 : i32
    %54 = vector.broadcast %c5_i32 : i32 to vector<8x128xi32>
    %55 = arith.cmpi eq, %0, %54 : vector<8x128xi32>
    %56 = arith.select %55, %12, %50 : vector<8x128xi1>, vector<8x128xf32>
    %57 = arith.subf %14, %20 : vector<8x128xf32>
    %58 = math.exp %57 : vector<8x128xf32>
    %59 = arith.addf %53, %58 : vector<8x128xf32>
    %c6_i32 = arith.constant 6 : i32
    %60 = vector.broadcast %c6_i32 : i32 to vector<8x128xi32>
    %61 = arith.cmpi eq, %0, %60 : vector<8x128xi32>
    %62 = arith.select %61, %14, %56 : vector<8x128xi1>, vector<8x128xf32>
    %63 = math.log %59 : vector<8x128xf32>
    %64 = arith.addf %20, %63 : vector<8x128xf32>
    %65 = arith.subf %64, %62 : vector<8x128xf32>
    %c1024_i32 = arith.constant 1024 : i32
    %66 = arith.muli %arg0, %c1024_i32 : i32
    %67 = tpu.iota {dimensions = array<i32: 0>} : vector<8x128xi32>
    %c128_i32 = arith.constant 128 : i32
    %68 = vector.broadcast %c128_i32 : i32 to vector<8x128xi32>
    %69 = arith.muli %67, %68 : vector<8x128xi32>
    %70 = vector.broadcast %66 : i32 to vector<8x128xi32>
    %71 = arith.addi %70, %69 : vector<8x128xi32>
    %72 = tpu.iota {dimensions = array<i32: 1>} : vector<8x128xi32>
    %73 = arith.addi %71, %72 : vector<8x128xi32>
    %c0_16 = arith.constant 0 : index
    %74 = memref.load %arg1[%c0_16] : memref<1xi32, #tpu.memory_space<smem>>
    %75 = vector.broadcast %74 : i32 to vector<8x128xi32>
    %76 = arith.cmpi slt, %73, %75 : vector<8x128xi32>
    %c-100_i32 = arith.constant -100 : i32
    %77 = vector.broadcast %c-100_i32 : i32 to vector<8x128xi32>
    %78 = arith.cmpi ne, %0, %77 : vector<8x128xi32>
    %79 = arith.andi %76, %78 : vector<8x128xi1>
    %cst_17 = arith.constant 0.000000e+00 : f32
    %80 = vector.broadcast %cst_17 : f32 to vector<8x128xf32>
    %81 = arith.select %79, %65, %80 : vector<8x128xi1>, vector<8x128xf32>
    %cst_18 = arith.constant dense<0.000000e+00> : vector<128xf32>
    %82 = vector.multi_reduction <add>, %81, %cst_18 [0] : vector<8x128xf32> to vector<128xf32>
    %83 = vector.shape_cast %82 : vector<128xf32> to vector<1x128xf32>
    %c0_19 = arith.constant 0 : index
    %c0_20 = arith.constant 0 : index
    %84 = vector.load %arg4[%c0_19, %c0_20] : memref<2x128xf32, #tpu.memory_space<vmem>>, vector<1x128xf32>
    tpu.vector_store %arg4[%c0_19, %c0_20], %83 {strides = array<i32>} : memref<2x128xf32, #tpu.memory_space<vmem>>, vector<1x128xf32>,
    %85 = arith.extui %79 : vector<8x128xi1> to vector<8x128xi32>
    %86 = arith.sitofp %85 : vector<8x128xi32> to vector<8x128xf32>
    %cst_21 = arith.constant dense<0.000000e+00> : vector<128xf32>
    %87 = vector.multi_reduction <add>, %86, %cst_21 [0] : vector<8x128xf32> to vector<128xf32>
    %88 = vector.shape_cast %87 : vector<128xf32> to vector<1x128xf32>
    %c1_22 = arith.constant 1 : index
    %c0_23 = arith.constant 0 : index
    %89 = vector.load %arg4[%c1_22, %c0_23] : memref<2x128xf32, #tpu.memory_space<vmem>>, vector<1x128xf32>
    tpu.vector_store %arg4[%c1_22, %c0_23], %88 {strides = array<i32>} : memref<2x128xf32, #tpu.memory_space<vmem>>, vector<1x128xf32>,
    return
  }
  func.func @transform_0(%arg0: i32, %arg1: memref<1xi32, #tpu.memory_space<smem>>) -> (i32, i32, i32) {
    %c0_i32 = arith.constant 0 : i32
    %c0_i32_0 = arith.constant 0 : i32
    %c0_i32_1 = arith.constant 0 : i32
    return %c0_i32, %arg0, %c0_i32_0 : i32, i32, i32
  }
  func.func @transform_1(%arg0: i32, %arg1: memref<1xi32, #tpu.memory_space<smem>>) -> (i32, i32) {
    %c0_i32 = arith.constant 0 : i32
    %c0_i32_0 = arith.constant 0 : i32
    return %arg0, %c0_i32 : i32, i32
  }
  func.func @transform_2(%arg0: i32, %arg1: memref<1xi32, #tpu.memory_space<smem>>) -> (i32, i32) {
    %c0_i32 = arith.constant 0 : i32
    %c0_i32_0 = arith.constant 0 : i32
    return %c0_i32, %arg0 : i32, i32
  }
}

</mosaic_0001>

<bundles_post_ra>
// kernel: tpu_custom_call.1
= control target key start
LH: loop header
LB: loop body
LE: loop exit
PB: predicated region body
PF: predicated region fallthrough
CT: control target
= control target key end

     0   :  { %9 = vsyncpa [#allocation5], 0  ;;  %s317_s0 = inlined_call_operand.<no memory space> [shape: s32[1], index: 0, kind: input, shape index: {}]   ;;  %s318_s1 = inlined_call_operand.hbm [shape: f32[7,8,128], index: 1, kind: input, shape index: {}]   ;;  %s319_s2 = inlined_call_operand.hbm [shape: s32[8,128], index: 2, kind: input, shape index: {}]   ;;  %s320_s3 = inlined_call_operand.hbm [shape: f32[2,128], index: 3, kind: output, shape index: {}]  }
   0x1   :  { %10 = vsyncpa [#allocation8], 0 }
   0x2   :  { %11 = vsyncpa [#allocation6], 0  ;;  %s241_s12 = smov [#allocation4]  }
   0x3   :  { %s17_s13 = sshll.u32 %s241_s12, 4  ;;  %s18_s13 = int_to_ptr.vmem [resolvable:$true] %s17_s13 }
   0x4   :  { %s183_s14 = scalar_lea.vmem %s18_s13, 896  ;;  %p188_p1 = scmp.lt.s32.totalorder %s18_s13, %s18_s13 }
   0x5   :  { %p184_p0 = scmp.ne.s32.totalorder %s18_s13, %s183_s14  ;;  %p189_p2 = scmp.lt.s32.totalorder %s183_s14, %s183_s14 }
   0x7   :  { %p190_p3 = por %p189_p2, %p188_p1 }
   0x9   :  { %p191_p4 = pnand %p190_p3, %p184_p0 }
   0xb   :  { %194 = shalt.err (!%p191_p4)
}
   0xc   :  { %s242_s15 = smov 128   ;;  %s243_s16 = smov 8  }
   0xd   :  { %23 = dma.hbm_to_vmem [thread:$0]  %s318_s1, 896, %s18_s13, [#allocation5], %s242_s15, %s242_s15, %s243_s16  }
   0xe   :  { %s244_s19 = smov [#allocation7]  }
   0xf   :  { %s30_s20 = sshll.u32 %s244_s19, 4  ;;  %s31_s20 = int_to_ptr.vmem [resolvable:$true] %s30_s20 }
  0x10   :  { %s203_s21 = scalar_lea.vmem %s31_s20, 128  ;;  %p208_p6 = scmp.lt.s32.totalorder %s31_s20, %s31_s20 }
  0x11   :  { %p204_p5 = scmp.ne.s32.totalorder %s31_s20, %s203_s21  ;;  %p209_p7 = scmp.lt.s32.totalorder %s203_s21, %s203_s21 }
  0x13   :  { %p210_p8 = por %p209_p7, %p208_p6 }
  0x15   :  { %p211_p9 = pnand %p210_p8, %p204_p5 }
  0x17   :  { %214 = shalt.err (!%p211_p9)
}
  0x18   :  { %33 = dma.hbm_to_vmem [thread:$0]  %s319_s2, 128, %s31_s20, [#allocation8]  }
  0x19   :  { %235 = dma.done.wait [#allocation5], 896  }
  0x1a   :  { %236 = vsyncadd [#allocation5], 4294966400 }
  0x1b   :  { %237 = dma.done.wait [#allocation8], 128  }
  0x1c   :  { %238 = vsyncadd [#allocation8], 4294967168  ;;  %v106_v0 = vlaneseq  ;;  %v41_v5 = vld [vmem:[#allocation4] sm:$0xff]  ;;  %v273_v6 = vld [vmem:[#allocation4 + $0x8] sm:$0xff]  ;;  %v115_v7 = vstv %s317_s0  ;;  %v245_v17 = vmov 0.0   ;;  %s246_s0 = smov [#allocation9]  }
  0x1d   :  { %v278_v8 = vld [vmem:[#allocation4 + $0x10] sm:$0xff]  ;;  %v54_v9 = vmax.f32 %v41_v5, %v273_v6  ;;  %v281_v10 = vld [vmem:[#allocation4 + $0x18] sm:$0xff]  ;;  %v286_v13 = vld [vmem:[#allocation4 + $0x20] sm:$0xff]  ;;  %s142_s2 = sshll.u32 %s246_s0, 4  ;;  %s143_s2 = int_to_ptr.vmem [resolvable:$true] %s142_s2 }
  0x1e   :  { %v107_v1 = vshrl.u32 %v106_v0, 7  ;;  %v112_v2 = vand.u32 127, %v106_v0  ;;  %v283_v11 = vld [vmem:[#allocation7] sm:$0xff]  ;;  %v51_v16 = vld [vmem:[#allocation4 + $0x28] sm:$0xff]  ;;  %v53_v21 = vld [vmem:[#allocation4 + $0x30] sm:$0xff]  ;;  %s215_s25 = scalar_lea.vmem %s143_s2, 32  ;;  %p220_p11 = scmp.lt.s32.totalorder %s143_s2, %s143_s2 }
  0x1f   :  { %v55_v12 = vmax.f32 %v54_v9, %v278_v8  ;;  %vm117_vm1 = vcmp.ne.s32.totalorder %v283_v11, 4294967196  ;;  %vm63_vm3 = vcmp.eq.s32.totalorder %v283_v11, 0  ;;  %vm69_vm4 = vcmp.eq.s32.totalorder %v283_v11, 1  ;;  %p216_p10 = scmp.ne.s32.totalorder %s143_s2, %s215_s25  ;;  %p221_p12 = scmp.lt.s32.totalorder %s215_s25, %s215_s25 }
  0x20   :  { %v108_v3 = vmul.u32 128, %v107_v1  ;;  %v64_v55 = vsel %vm63_vm3, %v41_v5, 0.0  ;;  %vm75_vm5 = vcmp.eq.s32.totalorder %v283_v11, 2  ;;  %vm81_vm6 = vcmp.eq.s32.totalorder %v283_v11, 3 }
  0x21   :  { %v56_v14 = vmax.f32 %v55_v12, %v281_v10  ;;  %v70_v57 = vsel %vm69_vm4, %v273_v6, %v64_v55  ;;  %vm87_vm7 = vcmp.eq.s32.totalorder %v283_v11, 4  ;;  %vm93_vm8 = vcmp.eq.s32.totalorder %v283_v11, 5  ;;  %p222_p13 = por %p221_p12, %p220_p11 }
  0x22   :  { %v113_v4 = vadd.s32 %v112_v2, %v108_v3  ;;  %v76_v58 = vsel %vm75_vm5, %v278_v8, %v70_v57  ;;  %vm99_vm9 = vcmp.eq.s32.totalorder %v283_v11, 6 }
  0x23   :  { %v57_v19 = vmax.f32 %v56_v14, %v286_v13  ;;  %v82_v59 = vsel %vm81_vm6, %v281_v10, %v76_v58  ;;  %p223_p0 = pnand %p222_p13, %p216_p10 }
  0x24   :  { %vm116_vm0 = vcmp.lt.s32.totalorder %v113_v4, %v115_v7  ;;  %v88_v60 = vsel %vm87_vm7, %v286_v13, %v82_v59 }
  0x25   :  { %vm290_vm2 = vmand %vm116_vm0, %vm117_vm1  ;;  %v58_v22 = vmax.f32 %v57_v19, %v51_v16  ;;  %v94_v61 = vsel %vm93_vm8, %v51_v16, %v88_v60 }
  0x26   :  { %v152_v18 = vsel %vm290_vm2, 1.0, %v245_v17  ;;  %v100_v0 = vsel %vm99_vm9, %v53_v21, %v94_v61 }
  0x27   :  { %v129_v20 = vrot.slane %v152_v18, 4  ;;  %v59_v24 = vmax.f32 %v58_v22, %v53_v21 }
  0x29   :  { %v130_v23 = vadd.f32 %v152_v18, %v129_v20  ;;  %v60_v26 = vsub.f32 %v41_v5, %v59_v24  ;;  %v65_v27 = vsub.f32 %v273_v6, %v59_v24  ;;  %v71_v28 = vsub.f32 %v278_v8, %v59_v24 }
  0x2a   :  { %v77_v29 = vsub.f32 %v281_v10, %v59_v24  ;;  %v83_v30 = vsub.f32 %v286_v13, %v59_v24  ;;  %v89_v36 = vsub.f32 %v51_v16, %v59_v24  ;;  %v95_v39 = vsub.f32 %v53_v21, %v59_v24 }
  0x2b   :  { %v131_v25 = vrot.slane %v130_v23, 2  ;;  %v61_v32 = vmul.f32 1.442695, %v60_v26  ;;  %v66_v33 = vmul.f32 1.442695, %v65_v27 }
  0x2c   :  { %v72_v34 = vmul.f32 1.442695, %v71_v28  ;;  %v78_v35 = vmul.f32 1.442695, %v77_v29  ;;  %v84_v38 = vmul.f32 1.442695, %v83_v30 }
  0x2d   :  { %v132_v31 = vadd.f32 %v131_v25, %v130_v23  ;;  %159 = vpow2.f32 %v61_v32  ;;  %v90_v41 = vmul.f32 1.442695, %v89_v36  ;;  %v96_v42 = vmul.f32 1.442695, %v95_v39 }
  0x2e   :  { %161 = vpow2.f32 %v66_v33 }
  0x2f   :  { %v133_v37 = vrot.slane %v132_v31, 1  ;;  %163 = vpow2.f32 %v72_v34 }
  0x30   :  { %165 = vpow2.f32 %v78_v35 }
  0x31   :  { %v134_v40 = vadd.f32 %v133_v37, %v132_v31  ;;  %167 = vpow2.f32 %v84_v38 }
  0x32   :  { %169 = vpow2.f32 %v90_v41 }
  0x33   :  { %135 = vst [vmem:[#allocation9 + $0x1] sm:$0x1] %v134_v40  ;;  %171 = vpow2.f32 %v96_v42 }
  0x3a   :  { %v160_v43 = vpop.eup %159 }
  0x3b   :  { %v162_v44 = vpop.eup %161 }
  0x3c   :  { %v164_v45 = vpop.eup %163  ;;  %v68_v46 = vadd.f32 %v162_v44, %v160_v43 }
  0x3d   :  { %v166_v47 = vpop.eup %165 }
  0x3e   :  { %v74_v48 = vadd.f32 %v164_v45, %v68_v46  ;;  %v168_v49 = vpop.eup %167 }
  0x3f   :  { %v170_v51 = vpop.eup %169 }
  0x40   :  { %v80_v50 = vadd.f32 %v166_v47, %v74_v48  ;;  %v172_v53 = vpop.eup %171 }
  0x42   :  { %v86_v52 = vadd.f32 %v168_v49, %v80_v50 }
  0x44   :  { %v92_v54 = vadd.f32 %v170_v51, %v86_v52 }
  0x46   :  { %v98_v56 = vadd.f32 %v172_v53, %v92_v54 }
  0x48   :  { %173 = vlog2.f32 %v98_v56 }
  0x55   :  { %v174_v62 = vpop.eup %173 }
  0x56   :  { %v102_v63 = vmul.f32 0.6931472, %v174_v62 }
  0x58   :  { %v103_v1 = vadd.f32 %v102_v63, %v59_v24 }
  0x5a   :  { %v104_v2 = vsub.f32 %v103_v1, %v100_v0 }
  0x5c   :  { %v119_v3 = vsel %vm290_vm2, %v104_v2, 0.0 }
  0x5d   :  { %v120_v4 = vrot.slane %v119_v3, 4 }
  0x5f   :  { %v121_v5 = vadd.f32 %v120_v4, %v119_v3 }
  0x61   :  { %v122_v6 = vrot.slane %v121_v5, 2 }
  0x63   :  { %v123_v7 = vadd.f32 %v122_v6, %v121_v5 }
  0x65   :  { %v124_v8 = vrot.slane %v123_v7, 1 }
  0x67   :  { %v125_v9 = vadd.f32 %v124_v8, %v123_v7 }
  0x69   :  { %126 = vst [vmem:[#allocation9] sm:$0x1] %v125_v9 }
  0x6a   :  { %226 = shalt.err (!%p223_p0)
}
  0x6b   :  { %145 = dma.vmem_to_hbm [thread:$0]  %s143_s2, 32, %s320_s3, [#allocation6]  }
  0x6c   :  { %239 = dma.done.wait [#allocation6], 32  }
  0x6d   :  { %240 = vsyncadd [#allocation6], 4294967264 }
  0x6e   :  { %149 = vsyncpa [#allocation5], 1 }
  0x6f   :  { %150 = vsyncpa [#allocation8], 1 }
  0x70   :  { %151 = vsyncpa [#allocation6], 1 }

</bundles_post_ra>
